<compile_context>
chip_gen: v5e
topology: v5e:2x2
jax: 0.10.0
libtpu: 0.0.40
codegen_flags: <defaults>
</compile_context>

<pallas_src>
import jax
import jax.numpy as jnp
from jax.experimental import pallas as pl
from jax.experimental.pallas import tpu as pltpu

_MIB = 1024 * 1024


def _logreg_kernel(x_ref, w_ref, b_ref, o_ref):
    # x_ref: (TB, D) f32 VMEM tile     w_ref: (1, D) f32 VMEM (resident)
    # b_ref: (1,)    f32 SMEM          o_ref: (1, TB) f32 VMEM (lane-dense)
    #
    # GEMV on the MXU, output already lane-dense: contract D of w with D of x
    # -> (1, TB).  No (TB, D) intermediate, no spill.
    z = jax.lax.dot_general(
        w_ref[...], x_ref[...],
        dimension_numbers=(((1,), (1,)), ((), ())),
        preferred_element_type=jnp.float32,
    )                                        # (1, TB)
    z = z + b_ref[0]                         # scalar bias from SMEM

    # Numerically-stable sigmoid as a single EUP transcendental.
    o_ref[...] = 0.5 * (jnp.tanh(0.5 * z) + 1.0)


def _vmem_capacity_bytes():
    # v5e/v6e: 128 MiB physical VMEM; v7x: 64 MiB per TensorCore.
    try:
        return int(pltpu.get_tpu_info().vmem_capacity_bytes)
    except Exception:
        return 64 * _MIB  # conservative (v7x-sized) default


def _choose_tiling(batch, input_dim, tile_rows=None):
    """Returns (vmem_limit_bytes, tile_rows, num_tiles)."""
    cap = _vmem_capacity_bytes()
    # Scoped VMEM limit: ~5/8 of physical (≈40 MiB on v7x, ≈80 MiB on v5e/v6e).
    scoped = min(cap * 5 // 8, 96 * _MIB)

    if tile_rows is None:
        # Per-buffer byte target: ~scoped/5 (≈8 MiB v7x, ≈16 MiB v5e/v6e).
        by_target = max(1, (scoped // 5) // (4 * input_dim))
        # Hard cap: double-buffered x tile + double-buffered out tile ≤ 0.7*scoped.
        by_vmem = max(1, (scoped * 7 // 10) // (8 * (input_dim + 1)))
        tile_rows = min(by_target, by_vmem)
    tile_rows = int(tile_rows)

    if tile_rows >= batch:
        return scoped, batch, 1              # single full-extent tile (exact dims)
    # Multi-tile: 128-row multiple satisfies both the (8, _) sublane constraint on
    # the x block and the (_, 128) lane constraint on the (1, TB) output block.
    tile_rows = max(128, (tile_rows // 128) * 128)
    if tile_rows >= batch:
        return scoped, batch, 1
    return scoped, tile_rows, pl.cdiv(batch, tile_rows)


def logistic_regression(x, w, b, *, tile_rows=None):
    """sigmoid(x @ w.T + b).

    x: (B, D); w: (1, D) (PyTorch nn.Linear(in, 1).weight layout); b: (1,).
    Returns (B, 1) float32.  `tile_rows` optionally overrides the batch tile size
    (used to exercise the multi-tile / ragged-edge path at small test shapes).
    """
    x = jnp.asarray(x, jnp.float32)
    w = jnp.asarray(w, jnp.float32).reshape(1, -1)
    b = jnp.asarray(b, jnp.float32).reshape(1)
    batch, input_dim = x.shape
    assert w.shape[1] == input_dim

    vmem_limit, tb, num_tiles = _choose_tiling(batch, input_dim, tile_rows)

    out_row = pl.pallas_call(
        _logreg_kernel,
        out_shape=jax.ShapeDtypeStruct((1, batch), jnp.float32),
        grid=(num_tiles,),
        in_specs=[
            # x: batch-tiled; DMA of tile i+1 overlaps compute on tile i; the
            # ragged last block (if any) is masked by Pallas — no host-side pad.
            pl.BlockSpec((tb, input_dim), lambda i: (i, 0)),
            # w: one (1, D) row, resident across the whole grid (fetched once).
            pl.BlockSpec((1, input_dim), lambda i: (0, 0)),
            # b: scalar in SMEM — no padded VMEM tile, no per-step DMA.
            pl.BlockSpec(memory_space=pltpu.MemorySpace.SMEM),
        ],
        # Lane-dense output blocks: unmasked dense stores, 128x fewer vreg passes
        # in the epilogue than a (TB, 1) layout.
        out_specs=pl.BlockSpec((1, tb), lambda i: (0, i)),
        compiler_params=pltpu.CompilerParams(
            dimension_semantics=("parallel",),
            vmem_limit_bytes=int(vmem_limit),
        ),
        cost_estimate=pl.CostEstimate(
            flops=2 * batch * input_dim,
            transcendentals=batch,
            bytes_accessed=4 * (batch * input_dim + input_dim + 1 + batch),
        ),
    )(x, w, b)
    return out_row.reshape(batch, 1)


if __name__ == "__main__":
    key = jax.random.PRNGKey(0)
    kx, kw, kb = jax.random.split(key, 3)

    batch, input_dim = 8, 32
    x = jax.random.normal(kx, (batch, input_dim), dtype=jnp.float32)
    # deterministic "nn.Linear(input_dim, 1)" params (synthetic init, PyTorch layout)
    w = jax.random.normal(kw, (1, input_dim), dtype=jnp.float32) * 0.1
    b = jax.random.normal(kb, (1,), dtype=jnp.float32) * 0.1

    out = jax.block_until_ready(logistic_regression(x, w, b))
    ref = jax.nn.sigmoid(x @ w.T + b)
    assert out.shape == (batch, 1)
    assert jnp.allclose(out, ref, atol=1e-4), "mismatch vs reference (single-tile case)"

    # Multi-tile + ragged-edge path: batch not a multiple of the forced 128-row tile.
    x2 = jax.random.normal(kx, (300, input_dim), dtype=jnp.float32)
    out2 = jax.block_until_ready(logistic_regression(x2, w, b, tile_rows=128))
    ref2 = jax.nn.sigmoid(x2 @ w.T + b)
    assert out2.shape == (300, 1)
    assert jnp.allclose(out2, ref2, atol=1e-4), "mismatch vs reference (ragged multi-tile case)"

    print("KERNEL_OK")
</pallas_src>

<mosaic_0001>
module attributes {stable_mosaic.version = 11 : i64} {
  func.func @_logreg_kernel(%arg0: i32, %arg1: memref<8x32xf32, #tpu.memory_space<vmem>>, %arg2: memref<1x32xf32, #tpu.memory_space<vmem>>, %arg3: memref<1xf32, #tpu.memory_space<smem>>, %arg4: memref<1x8xf32, #tpu.memory_space<vmem>>) attributes {dimension_semantics = [#tpu.dimension_semantics<parallel>], iteration_bounds = array<i64: 1>, scalar_prefetch = 0 : i64, scratch_operands = 0 : i64, tpu.core_type = #tpu.core_type<tc>, window_params = [{transform_indices = @transform_0, window_bounds = array<i64: 8, 32>}, {pipeline_mode = #tpu.pipeline_mode<synchronous>, transform_indices = @transform_1, window_bounds = array<i64: 1, 32>}, {transform_indices = @transform_2, window_bounds = array<i64: 1>}, {transform_indices = @transform_3, window_bounds = array<i64: 1, 8>}]} {
    %c0 = arith.constant 0 : index
    %c0_0 = arith.constant 0 : index
    %0 = vector.load %arg2[%c0, %c0_0] : memref<1x32xf32, #tpu.memory_space<vmem>>, vector<1x32xf32>
    %c0_1 = arith.constant 0 : index
    %c0_2 = arith.constant 0 : index
    %1 = vector.load %arg1[%c0_1, %c0_2] : memref<8x32xf32, #tpu.memory_space<vmem>>, vector<8x32xf32>
    %cst = arith.constant dense<0.000000e+00> : vector<1x8xf32>
    %2 = tpu.matmul %0, %1, %cst {dimension_numbers = #tpu.dot_dimension_numbers<[1], [1], [0], [0], [0, 0, 1, 0], [], []>} : vector<1x32xf32>, vector<8x32xf32>, vector<1x8xf32> -> vector<1x8xf32>
    %c0_3 = arith.constant 0 : index
    %3 = memref.load %arg3[%c0_3] : memref<1xf32, #tpu.memory_space<smem>>
    %4 = vector.broadcast %3 : f32 to vector<1x8xf32>
    %5 = arith.addf %2, %4 : vector<1x8xf32>
    %cst_4 = arith.constant 5.000000e-01 : f32
    %6 = vector.broadcast %cst_4 : f32 to vector<1x8xf32>
    %7 = arith.mulf %6, %5 : vector<1x8xf32>
    %8 = math.tanh %7 : vector<1x8xf32>
    %cst_5 = arith.constant 1.000000e+00 : f32
    %9 = vector.broadcast %cst_5 : f32 to vector<1x8xf32>
    %10 = arith.addf %8, %9 : vector<1x8xf32>
    %cst_6 = arith.constant 5.000000e-01 : f32
    %11 = vector.broadcast %cst_6 : f32 to vector<1x8xf32>
    %12 = arith.mulf %11, %10 : vector<1x8xf32>
    %c0_7 = arith.constant 0 : index
    %c0_8 = arith.constant 0 : index
    %13 = vector.load %arg4[%c0_7, %c0_8] : memref<1x8xf32, #tpu.memory_space<vmem>>, vector<1x8xf32>
    tpu.vector_store %arg4[%c0_7, %c0_8], %12 {strides = array<i32>} : memref<1x8xf32, #tpu.memory_space<vmem>>, vector<1x8xf32>,
    return
  }
  func.func @transform_0(%arg0: i32) -> (i32, i32) {
    %c0_i32 = arith.constant 0 : i32
    %c0_i32_0 = arith.constant 0 : i32
    return %arg0, %c0_i32 : i32, i32
  }
  func.func @transform_1(%arg0: i32) -> (i32, i32) {
    %c0_i32 = arith.constant 0 : i32
    %c0_i32_0 = arith.constant 0 : i32
    %c0_i32_1 = arith.constant 0 : i32
    return %c0_i32, %c0_i32_0 : i32, i32
  }
  func.func @transform_2(%arg0: i32) -> i32 {
    %c0_i32 = arith.constant 0 : i32
    %c0_i32_0 = arith.constant 0 : i32
    return %c0_i32 : i32
  }
  func.func @transform_3(%arg0: i32) -> (i32, i32) {
    %c0_i32 = arith.constant 0 : i32
    %c0_i32_0 = arith.constant 0 : i32
    return %c0_i32, %arg0 : i32, i32
  }
}

</mosaic_0001>

<bundles_post_ra>
// kernel: tpu_custom_call.1
= control target key start
LH: loop header
LB: loop body
LE: loop exit
PB: predicated region body
PF: predicated region fallthrough
CT: control target
= control target key end

     0   :  { %9 = vsyncpa [#allocation4], 0  ;;  %s176_s0 = inlined_call_operand.hbm [shape: f32[8,32], index: 0, kind: input, shape index: {}]   ;;  %s177_s1 = inlined_call_operand.vmem [shape: f32[1,32], index: 1, kind: input, shape index: {}]   ;;  %s178_s2 = inlined_call_operand.<no memory space> [shape: f32[1], index: 2, kind: input, shape index: {}]   ;;  %s179_s3 = inlined_call_operand.hbm [shape: f32[1,8], index: 3, kind: output, shape index: {}]  }
   0x1   :  { %10 = vsyncpa [#allocation5], 0  ;;  %s16_s14 = sshll.u32 %s176_s0, 4  ;;  %s142_s15 = smov [#allocation3]   ;;  %s17_s14 = int_to_ptr.hbm [resolvable:$true] %s16_s14 }
   0x2   :  { %s18_s16 = sshll.u32 %s142_s15, 4  ;;  %s19_s16 = int_to_ptr.vmem [resolvable:$true] %s18_s16 }
   0x3   :  { %21 = dma.hbm_to_vmem [thread:$0]  %s17_s14, 128, %s19_s16, [#allocation4]  }
   0x4   :  { %138 = dma.done.wait [#allocation4], 128  }
   0x5   :  { %139 = vsyncadd [#allocation4], 4294967168  ;;  %vm34_vm0 = vcmask 261120   ;;  %v31_v0 = vld [vmem:[#allocation3] sm:$0xff]  ;;  %v33_v2 = vstv %s178_s2  ;;  %s143_s0 = smov [#allocation6]   ;;  %s74_s24 = sshll.u32 %s179_s3, 4  ;;  %s75_s24 = int_to_ptr.hbm [resolvable:$true] %s74_s24 }
   0x6   :  { %84 = vmatpush.xpose.msk.msra.mxu0 %vm34_vm0, %v31_v0  ;;  %v30_v1 = vld [vmem:[%s177_s1] sm:$0x1]  ;;  %s72_s21 = sshll.u32 %s143_s0, 4  ;;  %vm65_vm1 = vcmask 57344   ;;  %s73_s21 = int_to_ptr.vmem [resolvable:$true] %s72_s21 }
   0x9   :  { %85 = vmatmul.msk.f32.vlgmr.msra.gmra.mxu0 %vm34_vm0, %v30_v1 }
  0x86   :  { %v58_v3 = vpop.f32.mrf.mxu0 }
  0x87   :  { %v59_v4 = vadd.f32 %v58_v3, %v33_v2 }
  0x89   :  { %v61_v5 = vmul.f32 0.5, %v59_v4 }
  0x8b   :  { %88 = vtanh.f32 %v61_v5 }
  0x91   :  { %v89_v6 = vpop.eup %88 }
  0x92   :  { %v63_v7 = vadd.f32 1.0, %v89_v6 }
  0x94   :  { %v64_v8 = vmul.f32 0.5, %v63_v7 }
  0x96   :  { %66 = vst.msk [vmem:[#allocation6] sm:$0x1] %vm65_vm1, %v64_v8 }
  0x97   :  { %77 = dma.vmem_to_hbm [thread:$0]  %s73_s21, 16, %s75_s24, [#allocation5]  }
  0x98   :  { %140 = dma.done.wait [#allocation5], 16  }
  0x99   :  { %141 = vsyncadd [#allocation5], 4294967280 }
  0x9a   :  { %82 = vsyncpa [#allocation4], 1 }
  0x9b   :  { %83 = vsyncpa [#allocation5], 1 }

</bundles_post_ra>
